<compile_context>
chip_gen: v7x
topology: tpu7x:2x2x1
jax: 0.10.0
libtpu: 0.0.40
codegen_flags: <defaults>
</compile_context>

<pallas_src>
import jax
import jax.numpy as jnp
import numpy as np
from jax import lax
from jax.experimental import pallas as pl
from jax.experimental.pallas import tpu as pltpu

# ------------------------- config (small, deterministic) -------------------------
HIDDEN = 128          # hidden_size
INTER = 256           # intermediate_size
SEQ = 256             # number of (packed) tokens
TM = 128              # token tile  -> grid axis 0 = 2 (even, v7x-friendly)
TI = 128              # intermediate tile -> grid axis 1 = 2 (reduction axis, last)


# ------------------------------ Pallas kernel ------------------------------
def mlp_kernel(x_ref, wg_ref, wu_ref, wd_ref, o_ref, acc_ref):
    # x_ref  : (TM, H)   bf16 token tile          (constant across the j axis)
    # wg_ref : (H, TI)   bf16 gate weight chunk   (streamed over j)
    # wu_ref : (H, TI)   bf16 up weight chunk     (streamed over j)
    # wd_ref : (TI, H)   bf16 down weight chunk   (streamed over j)
    # o_ref  : (TM, H)   output tile              (constant across j -> resident)
    # acc_ref: (TM, H)   f32 VMEM accumulator scratch
    j = pl.program_id(1)

    @pl.when(j == 0)
    def _init():
        acc_ref[...] = jnp.zeros_like(acc_ref)

    x = x_ref[...]                                                   # (TM, H) bf16
    # gate / up chunks: canonical (M,K)x(K,N), bf16 operands, f32 accumulate
    g = jnp.dot(x, wg_ref[...], preferred_element_type=jnp.float32)  # (TM, TI) f32
    u = jnp.dot(x, wu_ref[...], preferred_element_type=jnp.float32)  # (TM, TI) f32

    # silu(g) * u applied immediately on the small chunk (EUP logistic, VPU mul),
    # cast to bf16 once before feeding the MXU again.
    h = (g * lax.logistic(g) * u).astype(wd_ref.dtype)               # (TM, TI) bf16

    acc_ref[...] += jnp.dot(h, wd_ref[...],
                            preferred_element_type=jnp.float32)      # (TM, H) f32

    @pl.when(j == pl.num_programs(1) - 1)
    def _finalize():
        o_ref[...] = acc_ref[...].astype(o_ref.dtype)


def qwen2_mlp_forward(x, gate_up_w, down_w, *, tm=TM, ti=TI):
    """x: (S, H); gate_up_w: (2I, H); down_w: (H, I)  (PyTorch layouts).

    Returns (S, H) in x.dtype.
    """
    S, H = x.shape
    two_i, _ = gate_up_w.shape
    inter = two_i // 2
    assert S % tm == 0, "token count must be a multiple of the row tile"
    assert inter % ti == 0, "intermediate size must be a multiple of the I tile"
    # TODO(synk): ragged last token tile is not handled (needs padding/masking).

    # One-time layout prep of the constant weights: split the fused gate_up weight,
    # transpose everything to (in, out), and cast the MXU operands to bf16.
    xb = x.astype(jnp.bfloat16)
    wg = gate_up_w[:inter].T.astype(jnp.bfloat16)      # (H, I)
    wu = gate_up_w[inter:].T.astype(jnp.bfloat16)      # (H, I)
    wd = down_w.T.astype(jnp.bfloat16)                 # (I, H)

    grid = (S // tm, inter // ti)                      # reduction axis last

    # VMEM budget: double-buffered streamed blocks + resident output + f32 scratch.
    blk_bytes = (
        2 * tm * H * 2            # x tile (bf16), double-buffered
        + 2 * 2 * H * ti * 2      # wg + wu tiles (bf16), double-buffered
        + 2 * ti * H * 2          # wd tile (bf16), double-buffered
        + 2 * tm * H * x.dtype.itemsize  # output tile, double-buffered
        + tm * H * 4              # f32 accumulator scratch
    )
    vmem_limit = int(min(64 * 1024 * 1024, max(32 * 1024 * 1024, 4 * blk_bytes)))

    return pl.pallas_call(
        mlp_kernel,
        out_shape=jax.ShapeDtypeStruct((S, H), x.dtype),
        grid=grid,
        in_specs=[
            pl.BlockSpec((tm, H), lambda i, j: (i, 0)),   # x: per-token-tile, constant over j
            pl.BlockSpec((H, ti), lambda i, j: (0, j)),   # gate weight chunk (lane-dense)
            pl.BlockSpec((H, ti), lambda i, j: (0, j)),   # up weight chunk   (lane-dense)
            pl.BlockSpec((ti, H), lambda i, j: (j, 0)),   # down weight chunk (lane-dense)
        ],
        out_specs=pl.BlockSpec((tm, H), lambda i, j: (i, 0)),  # resident across j
        scratch_shapes=[pltpu.VMEM((tm, H), jnp.float32)],
        compiler_params=pltpu.CompilerParams(
            dimension_semantics=("parallel", "arbitrary"),
            vmem_limit_bytes=vmem_limit,
        ),
    )(xb, wg, wu, wd)


# ------------------------------ pure-JAX reference ------------------------------
def reference_forward_bf16(x, gate_up_w, down_w):
    """Same math as the kernel: bf16 MXU operands, f32 accumulation."""
    inter = down_w.shape[1]
    xb = x.astype(jnp.bfloat16)
    wgu = gate_up_w.astype(jnp.bfloat16)
    wd = down_w.astype(jnp.bfloat16)
    gate_up = jnp.dot(xb, wgu.T, preferred_element_type=jnp.float32)
    gate, up = gate_up[:, :inter], gate_up[:, inter:]
    h = (gate * jax.nn.sigmoid(gate) * up).astype(jnp.bfloat16)
    return jnp.dot(h, wd.T, preferred_element_type=jnp.float32).astype(x.dtype)


# ------------------------------ main ------------------------------
if __name__ == "__main__":
    key = jax.random.PRNGKey(0)
    k_x, k_gu, k_d = jax.random.split(key, 3)

    x = jax.random.normal(k_x, (SEQ, HIDDEN), dtype=jnp.float32)

    std = 0.02
    gate_up_w = std * jax.random.normal(k_gu, (2 * INTER, HIDDEN), dtype=jnp.float32)
    down_w = std * jax.random.normal(k_d, (HIDDEN, INTER), dtype=jnp.float32)

    out = qwen2_mlp_forward(x, gate_up_w, down_w)
    out = jax.block_until_ready(out)

    ref = reference_forward_bf16(x, gate_up_w, down_w)
    assert out.shape == (SEQ, HIDDEN)
    np.testing.assert_allclose(np.asarray(out), np.asarray(ref), rtol=2e-2, atol=2e-2)

    # TODO(synk): the `with torch.cuda.device(...)` context in the PyTorch module is a
    # device guard with no computational effect; nothing to translate.
    print("KERNEL_OK")
</pallas_src>

<mosaic_0001>
module attributes {stable_mosaic.version = 11 : i64} {
  func.func @mlp_kernel(%arg0: i32, %arg1: i32, %arg2: memref<128x128xbf16, #tpu.memory_space<vmem>>, %arg3: memref<128x128xbf16, #tpu.memory_space<vmem>>, %arg4: memref<128x128xbf16, #tpu.memory_space<vmem>>, %arg5: memref<128x128xbf16, #tpu.memory_space<vmem>>, %arg6: memref<128x128xf32, #tpu.memory_space<vmem>>, %arg7: memref<128x128xf32, #tpu.memory_space<vmem>>) attributes {dimension_semantics = [#tpu.dimension_semantics<parallel>, #tpu.dimension_semantics<arbitrary>], iteration_bounds = array<i64: 2, 2>, scalar_prefetch = 0 : i64, scratch_operands = 1 : i64, tpu.core_type = #tpu.core_type<tc>, window_params = [{transform_indices = @transform_0, window_bounds = array<i64: 128, 128>}, {transform_indices = @transform_1, window_bounds = array<i64: 128, 128>}, {transform_indices = @transform_2, window_bounds = array<i64: 128, 128>}, {transform_indices = @transform_3, window_bounds = array<i64: 128, 128>}, {transform_indices = @transform_4, window_bounds = array<i64: 128, 128>}]} {
    %c0_i32 = arith.constant 0 : i32
    %0 = arith.cmpi eq, %arg1, %c0_i32 : i32
    %1 = arith.extui %0 : i1 to i32
    %c0_i32_0 = arith.constant 0 : i32
    %2 = arith.cmpi ne, %1, %c0_i32_0 : i32
    scf.if %2 {
      %cst_16 = arith.constant 0.000000e+00 : f32
      %24 = vector.broadcast %cst_16 : f32 to vector<128x128xf32>
      %c0_17 = arith.constant 0 : index
      %c0_18 = arith.constant 0 : index
      %25 = vector.load %arg7[%c0_17, %c0_18] : memref<128x128xf32, #tpu.memory_space<vmem>>, vector<128x128xf32>
      tpu.vector_store %arg7[%c0_17, %c0_18], %24 {strides = array<i32>} : memref<128x128xf32, #tpu.memory_space<vmem>>, vector<128x128xf32>,
    } else {
    }
    %c0 = arith.constant 0 : index
    %c0_1 = arith.constant 0 : index
    %3 = vector.load %arg2[%c0, %c0_1] : memref<128x128xbf16, #tpu.memory_space<vmem>>, vector<128x128xbf16>
    %c0_2 = arith.constant 0 : index
    %c0_3 = arith.constant 0 : index
    %4 = vector.load %arg3[%c0_2, %c0_3] : memref<128x128xbf16, #tpu.memory_space<vmem>>, vector<128x128xbf16>
    %cst = arith.constant dense<0.000000e+00> : vector<128x128xf32>
    %5 = tpu.matmul %3, %4, %cst {dimension_numbers = #tpu.dot_dimension_numbers<[1], [0], [0], [1], [0, 0, 1, 1], [], []>} : vector<128x128xbf16>, vector<128x128xbf16>, vector<128x128xf32> -> vector<128x128xf32>
    %c0_4 = arith.constant 0 : index
    %c0_5 = arith.constant 0 : index
    %6 = vector.load %arg4[%c0_4, %c0_5] : memref<128x128xbf16, #tpu.memory_space<vmem>>, vector<128x128xbf16>
    %cst_6 = arith.constant dense<0.000000e+00> : vector<128x128xf32>
    %7 = tpu.matmul %3, %6, %cst_6 {dimension_numbers = #tpu.dot_dimension_numbers<[1], [0], [0], [1], [0, 0, 1, 1], [], []>} : vector<128x128xbf16>, vector<128x128xbf16>, vector<128x128xf32> -> vector<128x128xf32>
    %8 = arith.negf %5 : vector<128x128xf32>
    %9 = math.exp %8 : vector<128x128xf32>
    %cst_7 = arith.constant 1.000000e+00 : f32
    %10 = vector.broadcast %cst_7 : f32 to vector<128x128xf32>
    %11 = arith.addf %10, %9 : vector<128x128xf32>
    %12 = arith.divf %10, %11 : vector<128x128xf32>
    %13 = arith.mulf %5, %12 : vector<128x128xf32>
    %14 = arith.mulf %13, %7 : vector<128x128xf32>
    %15 = arith.truncf %14 : vector<128x128xf32> to vector<128x128xbf16>
    %c0_8 = arith.constant 0 : index
    %c0_9 = arith.constant 0 : index
    %16 = vector.load %arg7[%c0_8, %c0_9] : memref<128x128xf32, #tpu.memory_space<vmem>>, vector<128x128xf32>
    %c0_10 = arith.constant 0 : index
    %c0_11 = arith.constant 0 : index
    %17 = vector.load %arg5[%c0_10, %c0_11] : memref<128x128xbf16, #tpu.memory_space<vmem>>, vector<128x128xbf16>
    %cst_12 = arith.constant dense<0.000000e+00> : vector<128x128xf32>
    %18 = tpu.matmul %15, %17, %cst_12 {dimension_numbers = #tpu.dot_dimension_numbers<[1], [0], [0], [1], [0, 0, 1, 1], [], []>} : vector<128x128xbf16>, vector<128x128xbf16>, vector<128x128xf32> -> vector<128x128xf32>
    %19 = arith.addf %16, %18 : vector<128x128xf32>
    %c0_13 = arith.constant 0 : index
    %c0_14 = arith.constant 0 : index
    %20 = vector.load %arg7[%c0_13, %c0_14] : memref<128x128xf32, #tpu.memory_space<vmem>>, vector<128x128xf32>
    tpu.vector_store %arg7[%c0_13, %c0_14], %19 {strides = array<i32>} : memref<128x128xf32, #tpu.memory_space<vmem>>, vector<128x128xf32>,
    %c1_i32 = arith.constant 1 : i32
    %21 = arith.cmpi eq, %arg1, %c1_i32 : i32
    %22 = arith.extui %21 : i1 to i32
    %c0_i32_15 = arith.constant 0 : i32
    %23 = arith.cmpi ne, %22, %c0_i32_15 : i32
    scf.if %23 {
      %c0_16 = arith.constant 0 : index
      %c0_17 = arith.constant 0 : index
      %24 = vector.load %arg7[%c0_16, %c0_17] : memref<128x128xf32, #tpu.memory_space<vmem>>, vector<128x128xf32>
      %c0_18 = arith.constant 0 : index
      %c0_19 = arith.constant 0 : index
      %25 = vector.load %arg6[%c0_18, %c0_19] : memref<128x128xf32, #tpu.memory_space<vmem>>, vector<128x128xf32>
      tpu.vector_store %arg6[%c0_18, %c0_19], %24 {strides = array<i32>} : memref<128x128xf32, #tpu.memory_space<vmem>>, vector<128x128xf32>,
    } else {
    }
    return
  }
  func.func @transform_0(%arg0: i32, %arg1: i32) -> (i32, i32) {
    %c0_i32 = arith.constant 0 : i32
    %c0_i32_0 = arith.constant 0 : i32
    return %arg0, %c0_i32 : i32, i32
  }
  func.func @transform_1(%arg0: i32, %arg1: i32) -> (i32, i32) {
    %c0_i32 = arith.constant 0 : i32
    %c0_i32_0 = arith.constant 0 : i32
    return %c0_i32, %arg1 : i32, i32
  }
  func.func @transform_2(%arg0: i32, %arg1: i32) -> (i32, i32) {
    %c0_i32 = arith.constant 0 : i32
    %c0_i32_0 = arith.constant 0 : i32
    return %c0_i32, %arg1 : i32, i32
  }
  func.func @transform_3(%arg0: i32, %arg1: i32) -> (i32, i32) {
    %c0_i32 = arith.constant 0 : i32
    %c0_i32_0 = arith.constant 0 : i32
    return %arg1, %c0_i32 : i32, i32
  }
  func.func @transform_4(%arg0: i32, %arg1: i32) -> (i32, i32) {
    %c0_i32 = arith.constant 0 : i32
    %c0_i32_0 = arith.constant 0 : i32
    return %arg0, %c0_i32 : i32, i32
  }
}

</mosaic_0001>

<bundles_post_ra>
// kernel: tpu_custom_call.1
= control target key start
LH: loop header
LB: loop body
LE: loop exit
PB: predicated region body
PF: predicated region fallthrough
CT: control target
= control target key end

     0   :  { %s2617_s0 = inlined_call_operand.hbm [shape: bf16[256,128], index: 0, kind: input, shape index: {}]   ;;  %s2618_s1 = inlined_call_operand.hbm [shape: bf16[128,256], index: 1, kind: input, shape index: {}]   ;;  %s2619_s2 = inlined_call_operand.hbm [shape: bf16[128,256], index: 2, kind: input, shape index: {}]   ;;  %s2620_s3 = inlined_call_operand.hbm [shape: bf16[256,128], index: 3, kind: input, shape index: {}]   ;;  %s2621_s4 = inlined_call_operand.hbm [shape: f32[256,128], index: 4, kind: output, shape index: {}]  }
   0x1   :  { %2644 = sst [smem:[#allocation26_spill]] %s2618_s1 }
   0x2   :  { %2645 = sst [smem:[#allocation27_spill]] %s2621_s4 }
   0x3   :  { %9 = vsyncpa [#allocation4], 0 }
   0x4   :  { %11 = vsyncpa [#allocation4 + $0x1], 0 }
   0x5   :  { %12 = vsyncpa [#allocation7], 0 }
   0x6   :  { %14 = vsyncpa [#allocation7 + $0x1], 0 }
   0x7   :  { %15 = vsyncpa [#allocation10], 0 }
   0x8   :  { %17 = vsyncpa [#allocation10 + $0x1], 0 }
   0x9   :  { %18 = vsyncpa [#allocation5], 0 }
   0xa   :  { %20 = vsyncpa [#allocation5 + $0x1], 0  ;;  %s2043_s15 = smov 0   ;;  %s2045_s16 = smov 0  }
   0xb   :  { %s2047_s17 = smov 0   ;;  %s2049_s18 = smov 0  }
   0xc   :  { %s2051_s19 = smov 0   ;;  %s2053_s20 = smov 0  }
   0xd   :  { %s2055_s21 = smov 0   ;;  %s2057_s22 = smov 0  }
   0xe   :  { %s2059_s23 = smov 0   ;;  %s2061_s24 = smov 0  }
   0xf   :  { %s2063_s25 = smov 0  }
  0x10 LB: > { %2646 = sst [smem:[#allocation16_spill]] %s1969_s16  ;;  %s35_s26 = sadd.s32 1, %s1997_s23  ;;  %s2005_s25 = sphi %s2063_s25, %s26_s25   ;;  %s2001_s24 = sphi %s2061_s24, %s2693_s24   ;;  %s1997_s23 = sphi %s2059_s23, %s2699_s23   ;;  %s1993_s22 = sphi %s2057_s22, %s2691_s22   ;;  %s1989_s21 = sphi %s2055_s21, %s2698_s21   ;;  %s1985_s20 = sphi %s2053_s20, %s2690_s20   ;;  %s1981_s19 = sphi %s2051_s19, %s2697_s19   ;;  %s1977_s18 = sphi %s2049_s18, %s2696_s18   ;;  %s1973_s17 = sphi %s2047_s17, %s2695_s17   ;;  %s1969_s16 = sphi %s2045_s16, %s2694_s16   ;;  %s1965_s15 = sphi %s2043_s15, %s2687_s15  }
  0x11   : > { %2647 = sst [smem:[#allocation17_spill]] %s1985_s20  ;;  %p2626_p0 = scmp.eq.s32.totalorder %s2005_s25, 0 }
  0x12   : > { %2648 = sst [smem:[#allocation18_spill]] %s1989_s21  ;;  %p2100_p1 = scmp.ge.s32.totalorder %s35_s26, 2 }
  0x13   : > { %2649 = sst [smem:[#allocation19_spill]] %s1993_s22  ;;  %s71_s28 = sadd.s32 1, %s1973_s17 }
  0x14   : > { %2650 = sst [smem:[#allocation20_spill]] %s2001_s24  ;;  %p78_p2 = scmp.ne.s32.totalorder %s1973_s17, %s1969_s16 }
  0x15   : > { %s2651_s27 = scalar_select %p2100_p1, 1, 0 }
  0x16   : > { %s2701_s26 = smov (%p2100_p1, %s35_s26), 0  ;;  %p80_p4 = por %p78_p2, %p2626_p0 }
  0x17   : > { %2652 = sst [smem:[#allocation21_spill]] %s2701_s26  ;;  %s68_s29 = ssub.s32 %s1997_s23, %s2701_s26 }
  0x18   : > { %p2625_p5 = scmp.lt.s32.totalorder %s2005_s25, 4  ;;  %p69_p6 = scmp.eq.s32.totalorder %s68_s29, 0 }
  0x19   : > { %s207_s30 = sand.u32 1, %s2005_s25   ;;  %s2622_s6 = sand.u32 1, %s1973_s17  }
  0x1a   : > { %s2120_s5 = scalar_select %p69_p6, %s1973_s17, %s71_s28  }
  0x1b   : > { %s2125_s7 = sshll.u32 %s2622_s6, 6  ;;  %s1306_s8 = sshll.u32 %s1997_s23, 6 }
  0x1c   : > { %2653 = sst [smem:[#allocation22_spill]] %s2120_s5  ;;  %s2654_s1 = sld [smem:[#allocation26_spill]] }
  0x1d   : > { %s211_s12 = scalar_lea.vmem [#allocation6], %s2125_s7  ;;  %p2136_p7 = pnand %p2625_p5, %p80_p4 }
  0x1e   : > { %s217_s13 = sshll.u32 %s211_s12, 4  ;;  %s2145_s9 = scalar_lea.hbm %s2619_s2, %s1306_s8  ;;  %s2140_s13 = int_to_ptr.vmem [resolvable:$true] %s217_s13 }
  0x1f   : > { %s2655_s14 = scalar_select %p2136_p7, 1, 0 }
  0x20   : > { %s2147_s10 = scalar_lea.sflag [#allocation7], %s207_s30  ;;  %p2153_p9 = pneg %p2136_p7 }
  0x22   : > { %s2131_s11 = scalar_lea.hbm %s2654_s1, %s1306_s8  ;;  %s1760_s4 = scalar_lea.hbm %s2654_s1, 2048 }
  0x23   : > { %s1755_s6 = scalar_lea.hbm %s2131_s11, 1024  ;;  %p1761_p12 = scmp.lt.u32.totalorder %s2131_s11, %s2654_s1 }
  0x24   : > { %p1756_p8 = scmp.ne.s32.totalorder %s2131_s11, %s1755_s6  ;;  %p1762_p13 = scmp.lt.u32.totalorder %s1760_s4, %s1755_s6 }
  0x25   : > { %p1764_p4 = scmp.lt.u32.totalorder %s1755_s6, %s2131_s11 }
  0x26   : > { %p1758_p10 = pnand %p2153_p9, %p1756_p8  ;;  %p1763_p2 = por %p1762_p13, %p1761_p12 }
  0x28   : > { %p1759_p11 = pneg %p1758_p10  ;;  %p1765_p6 = por %p1764_p4, %p1763_p2 }
  0x2a   : > { %p1766_p5 = pnand %p1765_p6, %p1759_p11 }
  0x2c   : > { %1769 = shalt.err (!%p1766_p5)
}
  0x2d   : > { %s1770_s30 = scalar_lea.vmem %s2140_s13, 1024  ;;  %s2007_s26 = smov [#allocation6]  }
  0x2e   : > { %p1771_p8 = scmp.ne.s32.totalorder %s2140_s13, %s1770_s30  ;;  %s1775_s5 = sshll.u32 %s2007_s26, 4  ;;  %s1776_s5 = int_to_ptr.vmem [resolvable:$false] %s1775_s5 }
  0x2f   : > { %s1777_s29 = scalar_lea.vmem %s1776_s5, 2048  ;;  %p1778_p0 = scmp.lt.s32.totalorder %s2140_s13, %s1776_s5 }
  0x30   : > { %p1773_p10 = pnand %p1771_p8, %p2153_p9  ;;  %p1779_p1 = scmp.lt.s32.totalorder %s1777_s29, %s1770_s30 }
  0x32   : > { %p1774_p3 = pneg %p1773_p10  ;;  %p1780_p12 = por %p1779_p1, %p1778_p0 }
  0x34   : > { %p1781_p13 = pnand %p1780_p12, %p1774_p3 }
  0x36   : > { %1784 = shalt.err (!%p1781_p13)
}
  0x37   : > { %s2628_s4 = smov 128   ;;  %s2629_s6 = smov 64  }
  0x38   : > { %s2631_s28 = smov 4   ;;  %p1312_p0 = scmp.ge.s32.totalorder %s2005_s25, 1 }
  0x39   : > { %1552 = dma.hbm_to_vmem [thread:$0]  (!%p2136_p7), %s2131_s11, 1024, %s2140_s13, %s2147_s10, %s2628_s4, %s2629_s6, %s2631_s28  }
  0x3a   : > { %p266_p1 = scmp.lt.s32.totalorder %s2005_s25, 5  ;;  %s2187_s30 = sadd.s32 4294967295, %s2005_s25  }
  0x3b   : > { %s1299_s26 = sadd.s32 4294967294, %s2005_s25   ;;  %s38_s5 = sadd.s32 1, %s2001_s24 }
  0x3c   : > { %p2182_p3 = pnand %p1312_p0, %p266_p1  ;;  %p2658_p5 = scmp.ne.s32.totalorder %s2651_s27, 0 }
  0x3d   : > { %s45_s11 = sadd.s32 1, %s1985_s20  ;;  %p52_p11 = scmp.ne.s32.totalorder %s1985_s20, %s1981_s19 }
  0x3e   : > { %s2657_s8 = scalar_select %p2182_p3, 1, 0 }
  0x3f   : > { %s2703_s5 = smov (!%p2658_p5, %s38_s5), %s2001_s24  ;;  %p58_p4 = scmp.ne.s32.totalorder %s1981_s19, %s1977_s18 }
  0x40   : > { %p40_p2 = scmp.ge.s32.totalorder %s2703_s5, 2  ;;  %p2659_p6 = scmp.eq.s32.totalorder %s2005_s25, 0 }
  0x41   : > { %p59_p10 = scmp.eq.s32.totalorder %s2187_s30, 0  ;;  %p2663_p13 = scmp.ne.s32.totalorder %s1969_s16, %s1965_s15 }
  0x42   : > { %p2201_p8 = por %p2659_p6, %p52_p11  ;;  %s2705_s5 = smov (%p40_p2, %s2703_s5), 0 }
  0x43   : > { %2661 = sst [smem:[#allocation23_spill]] %s2705_s5  ;;  %p2211_p12 = por %p59_p10, %p58_p4 }
  0x44   : > { %p2218_p0 = por %p2663_p13, %p59_p10  ;;  %s42_s4 = ssub.s32 %s2001_s24, %s2705_s5 }
  0x45   : > { %s2662_s27 = scalar_select %p2211_p12, 1, 0 }
  0x46   : > { %s2664_s29 = scalar_select %p2218_p0, 1, 0 }
  0x47   : > { %p160_p1 = scmp.eq.s32.totalorder %s2187_s30, 3  ;;  %p43_p5 = scmp.eq.s32.totalorder %s42_s4, 0 }
  0x48   : > { %2665 = sst [smem:[#allocation24_spill]] %s2664_s29  ;;  %p166_p6 = scmp.eq.s32.totalorder %s1299_s26, 3 }
  0x49   : > { %p2225_p2 = por %p160_p1, %p52_p11  ;;  %s186_s28 = sand.u32 1, %s1985_s20  }
  0x4a   : > { %s2231_s1 = scalar_select %p43_p5, %s1985_s20, %s45_s11  }
  0x4b   : > { %s2666_s6 = scalar_select %p2225_p2, 1, 0 }
  0x4c   : > { %2667 = sst [smem:[#allocation25_spill]] %s2231_s1  ;;  %p2236_p3 = por %p166_p6, %p58_p4 }
  0x4d   : > { %s1302_s15 = sshll.u32 %s186_s28, 6  ;;  %s1373_s21 = sshll.u32 %s2001_s24, 10 }
  0x4e   : > { %s2668_s22 = scalar_select %p2236_p3, 1, 0 }
  0x4f   : > { %s2244_s5 = scalar_lea.hbm %s2617_s0, %s1373_s21  ;;  %s190_s4 = scalar_lea.vmem [#allocation3], %s1302_s15 }
  0x50   : > { %s197_s26 = sshll.u32 %s190_s4, 4  ;;  %p2669_p11 = scmp.lt.s32.totalorder %s2005_s25, 4  ;;  %s2254_s26 = int_to_ptr.vmem [resolvable:$true] %s197_s26 }
  0x51   : > { %s231_s24 = scalar_lea.vmem [#allocation8], %s2125_s7  ;;  %s2259_s21 = scalar_lea.sflag [#allocation4], %s186_s28 }
  0x52   : > { %p2250_p10 = pnand %p2669_p11, %p2201_p8  ;;  %s2257_s16 = sshll.u32 %s231_s24, 4  ;;  %s2291_s16 = int_to_ptr.vmem [resolvable:$true] %s2257_s16 }
  0x53   : > { %s1785_s29 = scalar_lea.hbm %s2244_s5, 1024  ;;  %s1790_s4 = scalar_lea.hbm %s2617_s0, 2048 }
  0x54   : > { %p1786_p4 = scmp.ne.s32.totalorder %s2244_s5, %s1785_s29  ;;  %p1787_p13 = pneg %p2250_p10 }
  0x55   : > { %p1791_p5 = scmp.lt.u32.totalorder %s2244_s5, %s2617_s0  ;;  %p1792_p6 = scmp.lt.u32.totalorder %s1790_s4, %s1785_s29 }
  0x56   : > { %p1788_p1 = pnand %p1787_p13, %p1786_p4  ;;  %p1794_p3 = scmp.lt.u32.totalorder %s1785_s29, %s2244_s5 }
  0x57   : > { %p1793_p11 = por %p1792_p6, %p1791_p5 }
  0x58   : > { %p1789_p8 = pneg %p1788_p1 }
  0x59   : > { %p1795_p2 = por %p1794_p3, %p1793_p11 }
  0x5b   : > { %p1796_p0 = pnand %p1795_p2, %p1789_p8 }
  0x5d   : > { %1799 = shalt.err (!%p1796_p0)
}
  0x5e   : > { %s1800_s24 = scalar_lea.vmem %s2254_s26, 1024  ;;  %s2011_s28 = smov [#allocation3]  }
  0x5f   : > { %p1801_p4 = scmp.ne.s32.totalorder %s2254_s26, %s1800_s24  ;;  %s1805_s13 = sshll.u32 %s2011_s28, 4  ;;  %s1806_s13 = int_to_ptr.vmem [resolvable:$false] %s1805_s13 }
  0x60   : > { %s1807_s1 = scalar_lea.vmem %s1806_s13, 2048  ;;  %p1808_p7 = scmp.lt.s32.totalorder %s2254_s26, %s1806_s13 }
  0x61   : > { %p1803_p1 = pnand %p1801_p4, %p1787_p13  ;;  %p1809_p5 = scmp.lt.s32.totalorder %s1807_s1, %s1800_s24 }
  0x63   : > { %p1804_p12 = pneg %p1803_p1  ;;  %p1810_p6 = por %p1809_p5, %p1808_p7 }
  0x65   : > { %p1811_p3 = pnand %p1810_p6, %p1804_p12 }
  0x67   : > { %1814 = shalt.err (!%p1811_p3)
}
  0x68   : > { %s2671_s20 = smov 4   ;;  %s2672_s29 = smov 64  }
  0x69   : > { %1549 = dma.hbm_to_vmem [thread:$0]  (!%p2250_p10), %s2244_s5, 1024, %s2254_s26, %s2259_s21, %s2672_s29, %s2672_s29, %s2671_s20  }
  0x6a   : > { %s1815_s15 = scalar_lea.hbm %s2145_s9, 1024  ;;  %s1820_s24 = scalar_lea.hbm %s2619_s2, 2048 }
  0x6b   : > { %p1816_p7 = scmp.ne.s32.totalorder %s2145_s9, %s1815_s15  ;;  %p1821_p2 = scmp.lt.u32.totalorder %s2145_s9, %s2619_s2 }
  0x6c   : > { %p1822_p13 = scmp.lt.u32.totalorder %s1820_s24, %s1815_s15  ;;  %p1824_p11 = scmp.lt.u32.totalorder %s1815_s15, %s2145_s9 }
  0x6d   : > { %p1818_p12 = pnand %p1816_p7, %p2153_p9 }
  0x6e   : > { %p1823_p8 = por %p1822_p13, %p1821_p2 }
  0x6f   : > { %p1819_p0 = pneg %p1818_p12 }
  0x70   : > { %p1825_p4 = por %p1824_p11, %p1823_p8 }
  0x72   : > { %p1826_p10 = pnand %p1825_p4, %p1819_p0 }
  0x74   : > { %1829 = shalt.err (!%p1826_p10)
}
  0x75   : > { %s1830_s5 = scalar_lea.vmem %s2291_s16, 1024  ;;  %s2012_s26 = smov [#allocation8]  }
  0x76   : > { %p1831_p1 = scmp.ne.s32.totalorder %s2291_s16, %s1830_s5  ;;  %s1835_s21 = sshll.u32 %s2012_s26, 4  ;;  %s1836_s21 = int_to_ptr.vmem [resolvable:$false] %s1835_s21 }
  0x77   : > { %s1837_s1 = scalar_lea.vmem %s1836_s21, 2048  ;;  %p1838_p3 = scmp.lt.s32.totalorder %s2291_s16, %s1836_s21 }
  0x78   : > { %p1833_p5 = pnand %p1831_p1, %p2153_p9  ;;  %p1839_p7 = scmp.lt.s32.totalorder %s1837_s1, %s1830_s5 }
  0x7a   : > { %p1834_p6 = pneg %p1833_p5  ;;  %p1840_p12 = por %p1839_p7, %p1838_p3 }
  0x7c   : > { %p1841_p2 = pnand %p1840_p12, %p1834_p6 }
  0x7e   : > { %1844 = shalt.err (!%p1841_p2)
}
  0x7f   : > { %p2673_p0 = scmp.ne.s32.totalorder %s2655_s14, 0  ;;  %s2674_s15 = smov 128  }
  0x80   : > { %s1374_s11 = sshll.u32 %s1997_s23, 10  ;;  %s251_s13 = scalar_lea.vmem [#allocation9], %s2125_s7 }
  0x81   : > { %1555 = dma.hbm_to_vmem [thread:$0]  (!%p2673_p0), %s2145_s9, 1024, %s2291_s16, %s2147_s10, %s2674_s15, %s2672_s29, %s2671_s20  }
  0x82   : > { %s2322_s28 = scalar_lea.hbm %s2620_s3, %s1374_s11  ;;  %s258_s5 = sshll.u32 %s251_s13, 4  ;;  %s2325_s5 = int_to_ptr.vmem [resolvable:$true] %s258_s5 }
  0x83   : > { %s2675_s26 = sand.u32 1, %s1973_s17   ;;  %s1845_s1 = scalar_lea.hbm %s2322_s28, 1024 }
  0x84   : > { %s2329_s21 = scalar_lea.sflag [#allocation10], %s2675_s26  ;;  %p1846_p13 = scmp.ne.s32.totalorder %s2322_s28, %s1845_s1 }
  0x85   : > { %s1850_s16 = scalar_lea.hbm %s2620_s3, 2048  ;;  %p1851_p4 = scmp.lt.u32.totalorder %s2322_s28, %s2620_s3 }
  0x86   : > { %p1848_p8 = pnand %p1846_p13, %p2153_p9  ;;  %p1852_p10 = scmp.lt.u32.totalorder %s1850_s16, %s1845_s1 }
  0x87   : > { %p1854_p5 = scmp.lt.u32.totalorder %s1845_s1, %s2322_s28 }
  0x88   : > { %p1849_p11 = pneg %p1848_p8  ;;  %p1853_p1 = por %p1852_p10, %p1851_p4 }
  0x8a   : > { %p1855_p6 = por %p1854_p5, %p1853_p1 }
  0x8c   : > { %p1856_p3 = pnand %p1855_p6, %p1849_p11 }
  0x8e   : > { %1859 = shalt.err (!%p1856_p3)
}
  0x8f   : > { %s1860_s7 = scalar_lea.vmem %s2325_s5, 1024  ;;  %s2013_s4 = smov [#allocation9]  }
  0x90   : > { %p1861_p7 = scmp.ne.s32.totalorder %s2325_s5, %s1860_s7  ;;  %s1865_s24 = sshll.u32 %s2013_s4, 4  ;;  %s1866_s24 = int_to_ptr.vmem [resolvable:$false] %s1865_s24 }
  0x91   : > { %s1867_s13 = scalar_lea.vmem %s1866_s24, 2048  ;;  %p1868_p13 = scmp.lt.s32.totalorder %s2325_s5, %s1866_s24 }
  0x92   : > { %p1863_p12 = pnand %p1861_p7, %p2153_p9  ;;  %p1869_p8 = scmp.lt.s32.totalorder %s1867_s13, %s1860_s7 }
  0x94   : > { %p1864_p2 = pneg %p1863_p12  ;;  %p1870_p4 = por %p1869_p8, %p1868_p13 }
  0x96   : > { %p1871_p10 = pnand %p1870_p4, %p1864_p2 }
  0x98   : > { %1874 = shalt.err (!%p1871_p10)
}
  0x99   : > { %1558 = dma.hbm_to_vmem [thread:$0]  (!%p2673_p0), %s2322_s28, 1024, %s2325_s5, %s2329_s21, %s2672_s29, %s2672_s29, %s2671_s20  }
  0x9a   : > { %p2676_p9 = scmp.ne.s32.totalorder %s2657_s8, 0 }
  0x9b   : > { %s2359_s12 = sand.u32 (!%p2676_p9), 1, %s1981_s19   ;;  %p2677_p11 = scmp.ne.s32.totalorder (!%p2676_p9), %s2662_s27, 0 }
  0x9c   : > { %270 = sbr.rel (%p2676_p9) target bundleno = 753 (0x2f1), region = 36  ;;  %s1313_s26 = sshll.u32 (!%p2676_p9), %s2359_s12, 6 }
  0x9d   : > { %s273_s1 = scalar_lea.sflag (!%p2676_p9), [#allocation4], %s2359_s12  ;;  %s2363_s9 = scalar_lea.vmem (!%p2676_p9), [#allocation3], %s1313_s26 }
  0xa3   : > { %1948 = dma.done.wait (%p2677_p11), %s273_s1, 1024  }
  0xa4   : > { %1950 = vsyncadd (%p2677_p11), %s273_s1, 4294966272  ;;  %s2678_s14 = sld [smem:[#allocation16_spill]]  ;;  %s2679_s20 = sld [smem:[#allocation24_spill]] }
  0xa5   : > { %s281_s8 = sand.u32 1, %s2187_s30  }
  0xa6   : > { %s282_s5 = scalar_lea.sflag [#allocation7], %s281_s8 }
  0xaa   : > { %s283_s29 = sand.u32 1, %s2678_s14   ;;  %p2680_p0 = scmp.ne.s32.totalorder %s2679_s20, 0 }
  0xab   : > { %s1314_s28 = sshll.u32 %s283_s29, 6 }
  0xac   : > { %s2371_s21 = scalar_lea.vmem [#allocation6], %s1314_s28 }
  0xad   : > { %1952 = dma.done.wait (%p2680_p0), %s282_s5, 2048  }
  0xae   : > { %1954 = vsyncadd (%p2680_p0), %s282_s5, 4294965248  ;;  %s2377_s10 = scalar_lea.vmem [#allocation8], %s1314_s28  ;;  %s300_s16 = scalar_lea.sflag [#allocation10], %s283_s29 }
  0xaf   : > { %s2379_s27 = scalar_lea.vmem [#allocation9], %s1314_s28 }
  0xb0   : > { %1956 = dma.done.wait (%p2680_p0), %s300_s16, 1024  }
  0xb1   : > { %1958 = vsyncadd (%p2680_p0), %s300_s16, 4294966272  ;;  %s1317_s30 = sshll.u32 %s2359_s12, 7  ;;  %s2681_s11 = sld [smem:[#allocation18_spill]] }
  0xb2   : > { %s2386_s15 = scalar_lea.vmem [#allocation11], %s1317_s30 }
  0xb7   : > { %p1318_p1 = scmp.ne.s32.totalorder %s2681_s11, 0 }
  0xb8   : > { %v2014_v0 = vmov (!%p1318_p1), 0.0  }
  0xb9   : > { %350 = sbr.rel (%p1318_p1) target bundleno = 193 (0xc1), region = 56  ;;  %351 = vst [vmem:[#allocation2] sm:$0xff] (!%p1318_p1), %v2014_v0  ;;  %352 = vst [vmem:[#allocation2 + $0x8] sm:$0xff] (!%p1318_p1), %v2014_v0 }
  0xba   : > { %353 = vst [vmem:[#allocation2 + $0x10] sm:$0xff] (!%p1318_p1), %v2014_v0  ;;  %354 = vst [vmem:[#allocation2 + $0x18] sm:$0xff] (!%p1318_p1), %v2014_v0 }
  0xbb   : > { %355 = vst [vmem:[#allocation2 + $0x20] sm:$0xff] (!%p1318_p1), %v2014_v0  ;;  %356 = vst [vmem:[#allocation2 + $0x28] sm:$0xff] (!%p1318_p1), %v2014_v0 }
  0xbc   : > { %357 = vst [vmem:[#allocation2 + $0x30] sm:$0xff] (!%p1318_p1), %v2014_v0  ;;  %358 = vst [vmem:[#allocation2 + $0x38] sm:$0xff] (!%p1318_p1), %v2014_v0 }
  0xbd   : > { %359 = vst [vmem:[#allocation2 + $0x40] sm:$0xff] (!%p1318_p1), %v2014_v0  ;;  %360 = vst [vmem:[#allocation2 + $0x48] sm:$0xff] (!%p1318_p1), %v2014_v0 }
  0xbe   : > { %361 = vst [vmem:[#allocation2 + $0x50] sm:$0xff] (!%p1318_p1), %v2014_v0  ;;  %362 = vst [vmem:[#allocation2 + $0x58] sm:$0xff] (!%p1318_p1), %v2014_v0 }
  0xbf   : > { %363 = vst [vmem:[#allocation2 + $0x60] sm:$0xff] (!%p1318_p1), %v2014_v0  ;;  %364 = vst [vmem:[#allocation2 + $0x68] sm:$0xff] (!%p1318_p1), %v2014_v0 }
  0xc0   : > { %365 = vst [vmem:[#allocation2 + $0x70] sm:$0xff] %v2014_v0  ;;  %366 = vst [vmem:[#allocation2 + $0x78] sm:$0xff] %v2014_v0 }
  0xc1 PF: > { %v1659_v1 = vld [vmem:[%s2371_s21] sm:$0xff]   ;;  %v1660_v2 = vld [vmem:[%s2371_s21 + $0x8] sm:$0xff]   ;;  %v1661_v3 = vld [vmem:[%s2371_s21 + $0x10] sm:$0xff]   ;;  %s2682_s7 = sld [smem:[#allocation18_spill]] }
  0xc2   : > { %1424 = vmatprep.subr.bf16.mxu0 %v1659_v1  ;;  %v1666_v4 = vld [vmem:[%s2377_s10] sm:$0xff]   ;;  %v1662_v5 = vld [vmem:[%s2371_s21 + $0x18] sm:$0xff]   ;;  %v1668_v6 = vld [vmem:[%s2377_s10 + $0x8] sm:$0xff]  }
  0xc3   : > { %1425 = vmatpush3.bf16.msra.mxu0 %v1659_v1  ;;  %1456 = vmatprep.subr.bf16.mxu1 %v1666_v4  ;;  %v1669_v7 = vld [vmem:[%s2363_s9] sm:$0xff]   ;;  %v1671_v9 = vld [vmem:[%s2377_s10 + $0x10] sm:$0xff]   ;;  %v1672_v10 = vld [vmem:[%s2377_s10 + $0x18] sm:$0xff]  }
  0xc4   : > { %1426 = vmatprep.subr.bf16.mxu0 %v1660_v2  ;;  %1457 = vmatpush3.bf16.msra.mxu1 %v1666_v4  ;;  %v1663_v8 = vld [vmem:[%s2371_s21 + $0x20] sm:$0xff]   ;;  %v1664_v11 = vld [vmem:[%s2371_s21 + $0x28] sm:$0xff]   ;;  %v1665_v13 = vld [vmem:[%s2371_s21 + $0x30] sm:$0xff]  }
  0xc5   : > { %1458 = vmatprep.subr.bf16.mxu1 %v1668_v6  ;;  %1440 = vmatprep.mubr.bf16.mxu0 %v1669_v7  ;;  %v1675_v12 = vld [vmem:[%s2377_s10 + $0x20] sm:$0xff]   ;;  %v1667_v14 = vld [vmem:[%s2371_s21 + $0x38] sm:$0xff]   ;;  %v1676_v15 = vld [vmem:[%s2377_s10 + $0x28] sm:$0xff]  }
  0xc6   : > { %1472 = vmatprep.mubr.bf16.mxu1 %v1669_v7  ;;  %v1679_v16 = vld [vmem:[%s2377_s10 + $0x30] sm:$0xff]   ;;  %v1670_v17 = vld [vmem:[%s2363_s9 + $0x8] sm:$0xff]   ;;  %v1680_v19 = vld [vmem:[%s2377_s10 + $0x38] sm:$0xff]  }
  0xc7   : > { %1427 = vmatpush3.bf16.msra.mxu0 %v1660_v2  ;;  %v1673_v18 = vld [vmem:[%s2363_s9 + $0x10] sm:$0xff]   ;;  %v1674_v20 = vld [vmem:[%s2363_s9 + $0x18] sm:$0xff]   ;;  %v1677_v21 = vld [vmem:[%s2363_s9 + $0x20] sm:$0xff]   ;;  %p1367_p5 = scmp.ne.s32.totalorder %s2682_s7, 1 }
  0xc8   : > { %1428 = vmatprep.subr.bf16.mxu0 %v1661_v3  ;;  %1459 = vmatpush3.bf16.msra.mxu1 %v1668_v6  ;;  %v1678_v22 = vld [vmem:[%s2363_s9 + $0x28] sm:$0xff]   ;;  %v1681_v23 = vld [vmem:[%s2363_s9 + $0x30] sm:$0xff]   ;;  %v1682_v24 = vld [vmem:[%s2363_s9 + $0x38] sm:$0xff]  }
  0xc9   : > { %1460 = vmatprep.subr.bf16.mxu1 %v1671_v9  ;;  %v1683_v25 = vld [vmem:[%s2379_s27] sm:$0xff]   ;;  %v1684_v26 = vld [vmem:[%s2379_s27 + $0x8] sm:$0xff]   ;;  %v1685_v27 = vld [vmem:[%s2379_s27 + $0x10] sm:$0xff]  }
  0xca   : > { %v1686_v28 = vld [vmem:[%s2379_s27 + $0x18] sm:$0xff]   ;;  %v1687_v29 = vld [vmem:[%s2379_s27 + $0x20] sm:$0xff]   ;;  %v1688_v30 = vld [vmem:[%s2379_s27 + $0x28] sm:$0xff]  }
  0xcb   : > { %1429 = vmatpush3.bf16.msra.mxu0 %v1661_v3  ;;  %v1689_v31 = vld [vmem:[%s2379_s27 + $0x30] sm:$0xff]   ;;  %v1690_v32 = vld [vmem:[%s2379_s27 + $0x38] sm:$0xff]  }
  0xcc   : > { %1430 = vmatprep.subr.bf16.mxu0 %v1662_v5  ;;  %1461 = vmatpush3.bf16.msra.mxu1 %v1671_v9 }
  0xcd   : > { %1462 = vmatprep.subr.bf16.mxu1 %v1672_v10 }
  0xcf   : > { %1431 = vmatpush3.bf16.msra.mxu0 %v1662_v5 }
  0xd0   : > { %1432 = vmatprep.subr.bf16.mxu0 %v1663_v8  ;;  %1463 = vmatpush3.bf16.msra.mxu1 %v1672_v10 }
  0xd1   : > { %1464 = vmatprep.subr.bf16.mxu1 %v1675_v12 }
  0xd3   : > { %1433 = vmatpush3.bf16.msra.mxu0 %v1663_v8 }
  0xd4   : > { %1434 = vmatprep.subr.bf16.mxu0 %v1664_v11  ;;  %1465 = vmatpush3.bf16.msra.mxu1 %v1675_v12 }
  0xd5   : > { %1466 = vmatprep.subr.bf16.mxu1 %v1676_v15 }
  0xd7   : > { %1435 = vmatpush3.bf16.msra.mxu0 %v1664_v11 }
  0xd8   : > { %1436 = vmatprep.subr.bf16.mxu0 %v1665_v13  ;;  %1467 = vmatpush3.bf16.msra.mxu1 %v1676_v15 }
  0xd9   : > { %1468 = vmatprep.subr.bf16.mxu1 %v1679_v16 }
  0xdb   : > { %1437 = vmatpush3.bf16.msra.mxu0 %v1665_v13 }
  0xdc   : > { %1438 = vmatprep.subr.bf16.mxu0 %v1667_v14  ;;  %1469 = vmatpush3.bf16.msra.mxu1 %v1679_v16 }
  0xdd   : > { %1470 = vmatprep.subr.bf16.mxu1 %v1680_v19 }
  0xdf   : > { %1439 = vmatpush3.bf16.msra.mxu0 %v1667_v14 }
  0xe0   : > { %1471 = vmatpush3.bf16.msra.mxu1 %v1680_v19  ;;  %1488 = vmatprep.subr.bf16.mxu0 %v1683_v25 }
  0xe1   : > { %1520 = vmatprep.subr.bf16.mxu1 %v1683_v25 }
  0xe2   : > { %1441 = vmatmul.mubr.bf16.vlgmr.msra.gmra.mrb[0].mxu0 %v1670_v17 }
  0xe3   : > { %1444 = vmatprep.mubr.bf16.mxu0 %v1673_v18  ;;  %1473 = vmatmul.mubr.bf16.vlgmr.msra.gmra.mrb[0].mxu1 %v1670_v17 }
  0xe4   : > { %1476 = vmatprep.mubr.bf16.mxu1 %v1673_v18  ;;  %1489 = vmatpush3.bf16.msra.mxu0 %v1683_v25 }
  0xe5   : > { %1528 = vmatpush3.bf16.msra.mxu1 %v1683_v25  ;;  %1490 = vmatprep.subr.bf16.mxu0 %v1684_v26 }
  0xe6   : > { %1521 = vmatprep.subr.bf16.mxu1 %v1684_v26 }
  0xe8   : > { %1491 = vmatpush3.bf16.msra.mxu0 %v1684_v26 }
  0xe9   : > { %1529 = vmatpush3.bf16.msra.mxu1 %v1684_v26  ;;  %1492 = vmatprep.subr.bf16.mxu0 %v1685_v27 }
  0xea   : > { %1445 = vmatmul.mubr.bf16.gmra.mrb[4].mxu0 %v1674_v20  ;;  %1522 = vmatprep.subr.bf16.mxu1 %v1685_v27 }
  0xeb   : > { %1448 = vmatprep.mubr.bf16.mxu0 %v1677_v21  ;;  %1477 = vmatmul.mubr.bf16.gmra.mrb[4].mxu1 %v1674_v20 }
  0xec   : > { %1480 = vmatprep.mubr.bf16.mxu1 %v1677_v21  ;;  %1493 = vmatpush3.bf16.msra.mxu0 %v1685_v27 }
  0xed   : > { %1530 = vmatpush3.bf16.msra.mxu1 %v1685_v27  ;;  %1494 = vmatprep.subr.bf16.mxu0 %v1686_v28 }
  0xee   : > { %1523 = vmatprep.subr.bf16.mxu1 %v1686_v28 }
  0xf0   : > { %1495 = vmatpush3.bf16.msra.mxu0 %v1686_v28 }
  0xf1   : > { %1531 = vmatpush3.bf16.msra.mxu1 %v1686_v28  ;;  %1496 = vmatprep.subr.bf16.mxu0 %v1687_v29 }
  0xf2   : > { %1449 = vmatmul.mubr.bf16.gmra.mrb[8].mxu0 %v1678_v22  ;;  %1524 = vmatprep.subr.bf16.mxu1 %v1687_v29 }
  0xf3   : > { %1452 = vmatprep.mubr.bf16.mxu0 %v1681_v23  ;;  %1481 = vmatmul.mubr.bf16.gmra.mrb[8].mxu1 %v1678_v22 }
  0xf4   : > { %1484 = vmatprep.mubr.bf16.mxu1 %v1681_v23  ;;  %1497 = vmatpush3.bf16.msra.mxu0 %v1687_v29 }
  0xf5   : > { %1532 = vmatpush3.bf16.msra.mxu1 %v1687_v29  ;;  %1498 = vmatprep.subr.bf16.mxu0 %v1688_v30 }
  0xf6   : > { %1525 = vmatprep.subr.bf16.mxu1 %v1688_v30 }
  0xf8   : > { %1499 = vmatpush3.bf16.msra.mxu0 %v1688_v30 }
  0xf9   : > { %1533 = vmatpush3.bf16.msra.mxu1 %v1688_v30  ;;  %1500 = vmatprep.subr.bf16.mxu0 %v1689_v31 }
  0xfa   : > { %1453 = vmatmul.mubr.bf16.gmra.mrb[12].mxu0 %v1682_v24  ;;  %1526 = vmatprep.subr.bf16.mxu1 %v1689_v31 }
  0xfb   : > { %1485 = vmatmul.mubr.bf16.gmra.mrb[12].mxu1 %v1682_v24 }
  0xfc   : > { %1501 = vmatpush3.bf16.msra.mxu0 %v1689_v31 }
  0xfd   : > { %1534 = vmatpush3.bf16.msra.mxu1 %v1689_v31  ;;  %1502 = vmatprep.subr.bf16.mxu0 %v1690_v32 }
  0xfe   : > { %1527 = vmatprep.subr.bf16.mxu1 %v1690_v32 }
 0x100   : > { %1503 = vmatpush3.bf16.msra.mxu0 %v1690_v32 }
 0x101   : > { %1535 = vmatpush3.bf16.msra.mxu1 %v1690_v32 }
 0x1b5   : > { %v2421_v33 = vpop.f32.mrb[0].mxu0 }
 0x1b6   : > { %v1345_v34 = vmul.f32 -1.442695, %v2421_v33  ;;  %v2424_v35 = vpop.f32.mrb[1].mxu0  ;;  %v2433_v41 = vpop.f32.mrb[0].mxu1 }
 0x1b7   : > { %v1343_v36 = vmul.f32 -1.442695, %v2424_v35  ;;  %v2427_v37 = vpop.f32.mrb[2].mxu0  ;;  %v2437_v43 = vpop.f32.mrb[1].mxu1 }
 0x1b8   : > { %1691 = vpow2.f32 %v1345_v34  ;;  %v1346_v38 = vmul.f32 -1.442695, %v2427_v37  ;;  %v2430_v39 = vpop.f32.mrb[3].mxu0  ;;  %v2442_v46 = vpop.f32.mrb[2].mxu1 }
 0x1b9   : > { %1693 = vpow2.f32 %v1343_v36  ;;  %v1344_v40 = vmul.f32 -1.442695, %v2430_v39  ;;  %v2447_v49 = vpop.f32.mrb[3].mxu1 }
 0x1ba   : > { %1695 = vpow2.f32 %v1346_v38 }
 0x1bb   : > { %1697 = vpow2.f32 %v1344_v40 }
 0x1bd   : > { %v2435_v42 = vpop.f32.mrb[4].mxu0 }
 0x1be   : > { %v1349_v44 = vmul.f32 -1.442695, %v2435_v42  ;;  %v2440_v45 = vpop.f32.mrb[5].mxu0  ;;  %v2453_v58 = vpop.f32.mrb[4].mxu1 }
 0x1bf   : > { %v1347_v47 = vmul.f32 -1.442695, %v2440_v45  ;;  %v2445_v48 = vpop.f32.mrb[6].mxu0  ;;  %v2457_v62 = vpop.f32.mrb[5].mxu1 }
 0x1c0   : > { %1699 = vpow2.f32 %v1349_v44  ;;  %v1350_v50 = vmul.f32 -1.442695, %v2445_v48  ;;  %v2450_v51 = vpop.f32.mrb[7].mxu0  ;;  %v2462_v2 = vpop.f32.mrb[6].mxu1 }
 0x1c1   : > { %1701 = vpow2.f32 %v1347_v47  ;;  %v1348_v52 = vmul.f32 -1.442695, %v2450_v51  ;;  %v2467_v5 = vpop.f32.mrb[7].mxu1 }
 0x1c2   : > { %v1692_v53 = vpop.eup %1691  ;;  %1703 = vpow2.f32 %v1350_v50 }
 0x1c3   : > { %v1694_v54 = vpop.eup %1693  ;;  %v803_v55 = vadd.f32 1.0, %v1692_v53  ;;  %1705 = vpow2.f32 %v1348_v52 }
 0x1c4   : > { %v1696_v56 = vpop.eup %1695  ;;  %v801_v57 = vadd.f32 1.0, %v1694_v54 }
 0x1c5   : > { %v1698_v59 = vpop.eup %1697  ;;  %1707 = vrcp.f32 %v803_v55  ;;  %v804_v60 = vadd.f32 1.0, %v1696_v56  ;;  %v2455_v61 = vpop.f32.mrb[8].mxu0 }
 0x1c6   : > { %1709 = vrcp.f32 %v801_v57  ;;  %v802_v63 = vadd.f32 1.0, %v1698_v59  ;;  %v1353_v0 = vmul.f32 -1.442695, %v2455_v61  ;;  %v2460_v1 = vpop.f32.mrb[9].mxu0  ;;  %v2473_v14 = vpop.f32.mrb[8].mxu1 }
 0x1c7   : > { %1711 = vrcp.f32 %v804_v60  ;;  %v1351_v3 = vmul.f32 -1.442695, %v2460_v1  ;;  %v2465_v4 = vpop.f32.mrb[10].mxu0  ;;  %v2477_v18 = vpop.f32.mrb[9].mxu1 }
 0x1c8   : > { %1713 = vrcp.f32 %v802_v63  ;;  %v1354_v6 = vmul.f32 -1.442695, %v2465_v4  ;;  %v2470_v7 = vpop.f32.mrb[11].mxu0  ;;  %v2482_v22 = vpop.f32.mrb[10].mxu1 }
 0x1c9   : > { %1715 = vpow2.f32 %v1353_v0  ;;  %v1352_v8 = vmul.f32 -1.442695, %v2470_v7  ;;  %v2487_v26 = vpop.f32.mrb[11].mxu1 }
 0x1ca   : > { %v1700_v9 = vpop.eup %1699  ;;  %1717 = vpow2.f32 %v1351_v3 }
 0x1cb   : > { %v1702_v10 = vpop.eup %1701  ;;  %v807_v11 = vadd.f32 1.0, %v1700_v9  ;;  %1719 = vpow2.f32 %v1354_v6 }
 0x1cc   : > { %v1704_v12 = vpop.eup %1703  ;;  %v805_v13 = vadd.f32 1.0, %v1702_v10  ;;  %1721 = vpow2.f32 %v1352_v8 }
 0x1cd   : > { %v1706_v15 = vpop.eup %1705  ;;  %1723 = vrcp.f32 %v807_v11  ;;  %v808_v16 = vadd.f32 1.0, %v1704_v12  ;;  %v2475_v17 = vpop.f32.mrb[12].mxu0 }
 0x1ce   : > { %1725 = vrcp.f32 %v805_v13  ;;  %v806_v19 = vadd.f32 1.0, %v1706_v15  ;;  %v1357_v20 = vmul.f32 -1.442695, %v2475_v17  ;;  %v2480_v21 = vpop.f32.mrb[13].mxu0  ;;  %v2500_v53 = vpop.f32.mrb[12].mxu1 }
 0x1cf   : > { %v1708_v23 = vpop.eup %1707  ;;  %1727 = vrcp.f32 %v808_v16  ;;  %v1355_v24 = vmul.f32 -1.442695, %v2480_v21  ;;  %v2485_v25 = vpop.f32.mrb[14].mxu0 }
 0x1d0   : > { %v1710_v27 = vpop.eup %1709  ;;  %v851_v28 = vmul.f32 %v1708_v23, %v2421_v33  ;;  %1729 = vrcp.f32 %v806_v19  ;;  %v1358_v29 = vmul.f32 -1.442695, %v2485_v25  ;;  %v2491_v30 = vpop.f32.mrb[15].mxu0 }
 0x1d1   : > { %v1712_v31 = vpop.eup %1711  ;;  %v849_v32 = vmul.f32 %v1710_v27, %v2424_v35  ;;  %1731 = vpow2.f32 %v1357_v20  ;;  %v1356_v34 = vmul.f32 -1.442695, %v2491_v30  ;;  %v2503_v56 = vpop.f32.mrb[13].mxu1 }
 0x1d2   : > { %v1714_v36 = vpop.eup %1713  ;;  %v852_v38 = vmul.f32 %v1712_v31, %v2427_v37  ;;  %1733 = vpow2.f32 %v1355_v24  ;;  %v867_v40 = vmul.f32 %v2433_v41, %v851_v28  ;;  %v2505_v59 = vpop.f32.mrb[14].mxu1 }
 0x1d3   : > { %v1716_v44 = vpop.eup %1715  ;;  %v850_v33 = vmul.f32 %v1714_v36, %v2430_v39  ;;  %1735 = vpow2.f32 %v1358_v29  ;;  %v865_v47 = vmul.f32 %v849_v32, %v2437_v43  ;;  %v741_v0 = vpop.f32.mrb[15].mxu1 }
 0x1d4   : > { %v1718_v50 = vpop.eup %1717  ;;  %v811_v52 = vadd.f32 1.0, %v1716_v44  ;;  %1737 = vpow2.f32 %v1356_v34  ;;  %v868_v35 = vmul.f32 %v2442_v46, %v852_v38 }
 0x1d5   : > { %v1720_v54 = vpop.eup %1719  ;;  %v809_v55 = vadd.f32 1.0, %v1718_v50  ;;  %v866_v37 = vmul.f32 %v850_v33, %v2447_v49 }
 0x1d6   : > { %v1722_v41 = vpop.eup %1721  ;;  %1739 = vrcp.f32 %v811_v52  ;;  %v812_v57 = vadd.f32 1.0, %v1720_v54  ;;  %v882_v39 = vpack.c.bf16 %v868_v35, %v867_v40 }
 0x1d7   : > { %v1724_v43 = vpop.eup %1723  ;;  %1741 = vrcp.f32 %v809_v55  ;;  %v810_v60 = vadd.f32 1.0, %v1722_v41  ;;  %v881_v63 = vpack.c.bf16 %v866_v37, %v865_v47  ;;  %v892_v41 = vld [vmem:[#allocation2 + $0x18] sm:$0xff] }
 0x1d8   : > { %v1726_v46 = vpop.eup %1725  ;;  %v855_v3 = vmul.f32 %v1724_v43, %v2435_v42  ;;  %1743 = vrcp.f32 %v812_v57 }
 0x1d9   : > { %v1728_v6 = vpop.eup %1727  ;;  %v853_v49 = vmul.f32 %v1726_v46, %v2440_v45  ;;  %1745 = vrcp.f32 %v810_v60  ;;  %1504 = vmatprep.mubr.bf16.mxu0 %v881_v63  ;;  %v893_v63 = vld [vmem:[#allocation2 + $0x20] sm:$0xff]  ;;  %v896_v46 = vld [vmem:[#allocation2 + $0x38] sm:$0xff] }
 0x1da   : > { %v1730_v8 = vpop.eup %1729  ;;  %v856_v9 = vmul.f32 %v1728_v6, %v2445_v48  ;;  %v871_v10 = vmul.f32 %v2453_v58, %v855_v3  ;;  %1505 = vmatmul.mubr.bf16.vlgmr.msra.gmra.mrb[16].mxu0 %v882_v39  ;;  %v890_v39 = vld [vmem:[#allocation2 + $0x8] sm:$0xff] }
 0x1db   : > { %v1732_v11 = vpop.eup %1731  ;;  %v854_v12 = vmul.f32 %v1730_v8, %v2450_v51  ;;  %v869_v13 = vmul.f32 %v853_v49, %v2457_v62  ;;  %v894_v49 = vld [vmem:[#allocation2 + $0x28] sm:$0xff] }
 0x1dc   : > { %v1734_v15 = vpop.eup %1733  ;;  %v815_v16 = vadd.f32 1.0, %v1732_v11  ;;  %v872_v42 = vmul.f32 %v2462_v2, %v856_v9 }
 0x1dd   : > { %v1736_v19 = vpop.eup %1735  ;;  %v813_v20 = vadd.f32 1.0, %v1734_v15  ;;  %v870_v45 = vmul.f32 %v854_v12, %v2467_v5  ;;  %v897_v15 = vld [vmem:[#allocation2 + $0x40] sm:$0xff] }
 0x1de   : > { %v1738_v23 = vpop.eup %1737  ;;  %1747 = vrcp.f32 %v815_v16  ;;  %v816_v24 = vadd.f32 1.0, %v1736_v19  ;;  %v884_v48 = vpack.c.bf16 %v872_v42, %v871_v10  ;;  %v900_v42 = vld [vmem:[#allocation2 + $0x58] sm:$0xff] }
 0x1df   : > { %1749 = vrcp.f32 %v813_v20  ;;  %v814_v58 = vadd.f32 1.0, %v1738_v23  ;;  %v883_v27 = vpack.c.bf16 %v870_v45, %v869_v13  ;;  %v899_v13 = vld [vmem:[#allocation2 + $0x50] sm:$0xff]  ;;  %v898_v45 = vld [vmem:[#allocation2 + $0x48] sm:$0xff] }
 0x1e0   : > { %v1740_v28 = vpop.eup %1739  ;;  %1751 = vrcp.f32 %v816_v24 }
 0x1e1   : > { %v1742_v51 = vpop.eup %1741  ;;  %v859_v62 = vmul.f32 %v1740_v28, %v2455_v61  ;;  %1753 = vrcp.f32 %v814_v58  ;;  %1508 = vmatprep.mubr.bf16.mxu0 %v883_v27  ;;  %v903_v28 = vld [vmem:[#allocation2 + $0x70] sm:$0xff] }
 0x1e2   : > { %v1744_v29 = vpop.eup %1743  ;;  %v857_v2 = vmul.f32 %v1742_v51, %v2460_v1  ;;  %1509 = vmatmul.mubr.bf16.gmra.mrb[20].mxu0 %v884_v48  ;;  %v901_v51 = vld [vmem:[#allocation2 + $0x60] sm:$0xff] }
 0x1e3   : > { %v1746_v31 = vpop.eup %1745  ;;  %v860_v5 = vmul.f32 %v1744_v29, %v2465_v4  ;;  %v875_v32 = vmul.f32 %v2473_v14, %v859_v62  ;;  %v904_v29 = vld [vmem:[#allocation2 + $0x78] sm:$0xff] }
 0x1e4   : > { %v858_v34 = vmul.f32 %v1746_v31, %v2470_v7  ;;  %v873_v36 = vmul.f32 %v857_v2, %v2477_v18 }
 0x1e5   : > { %v876_v38 = vmul.f32 %v2482_v22, %v860_v5  ;;  %v902_v5 = vld [vmem:[#allocation2 + $0x68] sm:$0xff] }
 0x1e6   : > { %v874_v40 = vmul.f32 %v858_v34, %v2487_v26 }
 0x1e7   : > { %v886_v61 = vpack.c.bf16 %v876_v38, %v875_v32 }
 0x1e8   : > { %v1748_v44 = vpop.eup %1747  ;;  %v885_v33 = vpack.c.bf16 %v874_v40, %v873_v36 }
 0x1e9   : > { %v1750_v47 = vpop.eup %1749  ;;  %v863_v1 = vmul.f32 %v1748_v44, %v2475_v17  ;;  %v891_v17 = vld [vmem:[#allocation2 + $0x10] sm:$0xff] }
 0x1ea   : > { %v1752_v50 = vpop.eup %1751  ;;  %v861_v52 = vmul.f32 %v1750_v47, %v2480_v21  ;;  %1512 = vmatprep.mubr.bf16.mxu1 %v885_v33  ;;  %v889_v21 = vld [vmem:[#allocation2] sm:$0xff] }
 0x1eb   : > { %v1754_v4 = vpop.eup %1753  ;;  %v864_v14 = vmul.f32 %v1752_v50, %v2485_v25  ;;  %v879_v7 = vmul.f32 %v2500_v53, %v863_v1  ;;  %1513 = vmatmul.mubr.bf16.vlgmr.msra.gmra.mrb[16].mxu1 %v886_v61 }
 0x1ec   : > { %v862_v18 = vmul.f32 %v1754_v4, %v2491_v30  ;;  %v877_v22 = vmul.f32 %v861_v52, %v2503_v56 }
 0x1ed   : > { %v880_v26 = vmul.f32 %v2505_v59, %v864_v14  ;;  %v895_v59 = vld [vmem:[#allocation2 + $0x30] sm:$0xff] }
 0x1ee   : > { %v878_v35 = vmul.f32 %v862_v18, %v741_v0 }
 0x1ef   : > { %v888_v54 = vpack.c.bf16 %v880_v26, %v879_v7 }
 0x1f0   : > { %v887_v55 = vpack.c.bf16 %v878_v35, %v877_v22 }
 0x1f2   : > { %1516 = vmatprep.mubr.bf16.mxu1 %v887_v55 }
 0x1f3   : > { %1517 = vmatmul.mubr.bf16.gmra.mrb[20].mxu1 %v888_v54 }
 0x2ad   : > { %v1506_v37 = vpop.f32.mrb[16].mxu0 }
 0x2ae   : > { %v1068_v57 = vadd.f32 %v1506_v37, %v891_v17  ;;  %v1003_v25 = vpop.f32.mrb[17].mxu0 }
 0x2af   : > { %v1066_v53 = vadd.f32 %v1003_v25, %v889_v21  ;;  %v1507_v43 = vpop.f32.mrb[18].mxu0 }
 0x2b0   : > { %1084 = vst [vmem:[#allocation2 + $0x10] sm:$0xff] %v1068_v57  ;;  %v1069_v30 = vadd.f32 %v1507_v43, %v892_v41  ;;  %v1006_v60 = vpop.f32.mrb[19].mxu0 }
 0x2b1   : > { %1082 = vst [vmem:[#allocation2] sm:$0xff] %v1066_v53  ;;  %v1067_v56 = vadd.f32 %v1006_v60, %v890_v39 }
 0x2b2   : > { %1085 = vst [vmem:[#allocation2 + $0x18] sm:$0xff] %v1069_v30 }
 0x2b3   : > { %1083 = vst [vmem:[#allocation2 + $0x8] sm:$0xff] %v1067_v56 }
 0x2b5   : > { %v1510_v0 = vpop.f32.mrb[20].mxu0 }
 0x2b6   : > { %v1072_v3 = vadd.f32 %v1510_v0, %v895_v59  ;;  %v1019_v6 = vpop.f32.mrb[21].mxu0 }
 0x2b7   : > { %v1070_v8 = vadd.f32 %v1019_v6, %v893_v63  ;;  %v1511_v9 = vpop.f32.mrb[22].mxu0  ;;  %v1104_v33 = vld [vmem:[#allocation2 + $0x10] sm:$0xff] (!%p1367_p5) }
 0x2b8   : > { %1088 = vst [vmem:[#allocation2 + $0x30] sm:$0xff] %v1072_v3  ;;  %v1073_v10 = vadd.f32 %v1511_v9, %v896_v46  ;;  %v1022_v11 = vpop.f32.mrb[23].mxu0  ;;  %v1102_v61 = vld [vmem:[#allocation2] sm:$0xff] (!%p1367_p5)  ;;  %1120 = vst [vmem:[%s2386_s15 + $0x10] sm:$0xff] (!%p1367_p5), %v1104_v33 }
 0x2b9   : > { %1086 = vst [vmem:[#allocation2 + $0x20] sm:$0xff] %v1070_v8  ;;  %v1071_v12 = vadd.f32 %v1022_v11, %v894_v49  ;;  %1118 = vst [vmem:[%s2386_s15] sm:$0xff] (!%p1367_p5), %v1102_v61  ;;  %v1105_v47 = vld [vmem:[#allocation2 + $0x18] sm:$0xff] (!%p1367_p5) }
 0x2ba   : > { %1089 = vst [vmem:[#allocation2 + $0x38] sm:$0xff] %v1073_v10  ;;  %v1103_v44 = vld [vmem:[#allocation2 + $0x8] sm:$0xff] (!%p1367_p5)  ;;  %1121 = vst [vmem:[%s2386_s15 + $0x18] sm:$0xff] (!%p1367_p5), %v1105_v47 }
 0x2bb   : > { %1087 = vst [vmem:[#allocation2 + $0x28] sm:$0xff] %v1071_v12  ;;  %1119 = vst [vmem:[%s2386_s15 + $0x8] sm:$0xff] (!%p1367_p5), %v1103_v44 }
 0x2be   : > { %v1514_v16 = vpop.f32.mrb[16].mxu1 }
 0x2bf   : > { %v1076_v19 = vadd.f32 %v1514_v16, %v899_v13  ;;  %v1035_v20 = vpop.f32.mrb[17].mxu1  ;;  %v1108_v52 = vld [vmem:[#allocation2 + $0x30] sm:$0xff] (!%p1367_p5) }
 0x2c0   : > { %v1074_v23 = vadd.f32 %v1035_v20, %v897_v15  ;;  %v1515_v24 = vpop.f32.mrb[18].mxu1  ;;  %v1106_v1 = vld [vmem:[#allocation2 + $0x20] sm:$0xff] (!%p1367_p5)  ;;  %1124 = vst [vmem:[%s2386_s15 + $0x30] sm:$0xff] (!%p1367_p5), %v1108_v52 }
 0x2c1   : > { %1092 = vst [vmem:[#allocation2 + $0x50] sm:$0xff] %v1076_v19  ;;  %v1077_v48 = vadd.f32 %v1515_v24, %v900_v42  ;;  %v1038_v58 = vpop.f32.mrb[19].mxu1  ;;  %1122 = vst [vmem:[%s2386_s15 + $0x20] sm:$0xff] (!%p1367_p5), %v1106_v1  ;;  %v1109_v4 = vld [vmem:[#allocation2 + $0x38] sm:$0xff] (!%p1367_p5) }
 0x2c2   : > { %1090 = vst [vmem:[#allocation2 + $0x40] sm:$0xff] %v1074_v23  ;;  %v1075_v27 = vadd.f32 %v1038_v58, %v898_v45  ;;  %v1107_v50 = vld [vmem:[#allocation2 + $0x28] sm:$0xff] (!%p1367_p5)  ;;  %1125 = vst [vmem:[%s2386_s15 + $0x38] sm:$0xff] (!%p1367_p5), %v1109_v4 }
 0x2c3   : > { %1093 = vst [vmem:[#allocation2 + $0x58] sm:$0xff] %v1077_v48  ;;  %1123 = vst [vmem:[%s2386_s15 + $0x28] sm:$0xff] (!%p1367_p5), %v1107_v50 }
 0x2c4   : > { %1091 = vst [vmem:[#allocation2 + $0x48] sm:$0xff] %v1075_v27 }
 0x2c6   : > { %v1518_v62 = vpop.f32.mrb[20].mxu1  ;;  %1101 = sbr.rel (%p1367_p5) target bundleno = 725 (0x2d5), region = 60 }
 0x2c7   : > { %v1080_v2 = vadd.f32 %v1518_v62, %v903_v28  ;;  %v1051_v31 = vpop.f32.mrb[21].mxu1 }
 0x2c8   : > { %v1078_v32 = vadd.f32 %v1051_v31, %v901_v51  ;;  %v1519_v34 = vpop.f32.mrb[22].mxu1  ;;  %v1112_v18 = vld [vmem:[#allocation2 + $0x50] sm:$0xff] (!%p1367_p5) }
 0x2c9   : > { %1096 = vst [vmem:[#allocation2 + $0x70] sm:$0xff] %v1080_v2  ;;  %v1081_v36 = vadd.f32 %v1519_v34, %v904_v29  ;;  %v1054_v38 = vpop.f32.mrb[23].mxu1  ;;  %v1110_v14 = vld [vmem:[#allocation2 + $0x40] sm:$0xff] (!%p1367_p5)  ;;  %1128 = vst [vmem:[%s2386_s15 + $0x50] sm:$0xff] (!%p1367_p5), %v1112_v18 }
 0x2ca   : > { %1094 = vst [vmem:[#allocation2 + $0x60] sm:$0xff] %v1078_v32  ;;  %v1079_v40 = vadd.f32 %v1054_v38, %v902_v5  ;;  %1126 = vst [vmem:[%s2386_s15 + $0x40] sm:$0xff] (!%p1367_p5), %v1110_v14  ;;  %v1113_v22 = vld [vmem:[#allocation2 + $0x58] sm:$0xff] (!%p1367_p5) }
 0x2cb   : > { %1097 = vst [vmem:[#allocation2 + $0x78] sm:$0xff] %v1081_v36  ;;  %v1111_v7 = vld [vmem:[#allocation2 + $0x48] sm:$0xff] (!%p1367_p5)  ;;  %1129 = vst [vmem:[%s2386_s15 + $0x58] sm:$0xff] (!%p1367_p5), %v1113_v22 }
 0x2cc   : > { %1095 = vst [vmem:[#allocation2 + $0x68] sm:$0xff] %v1079_v40  ;;  %1127 = vst [vmem:[%s2386_s15 + $0x48] sm:$0xff] (!%p1367_p5), %v1111_v7 }
 0x2d0   : > { %v1116_v54 = vld [vmem:[#allocation2 + $0x70] sm:$0xff] }
 0x2d1   : > { %v1114_v26 = vld [vmem:[#allocation2 + $0x60] sm:$0xff]  ;;  %1132 = vst [vmem:[%s2386_s15 + $0x70] sm:$0xff] %v1116_v54 }
 0x2d2   : > { %1130 = vst [vmem:[%s2386_s15 + $0x60] sm:$0xff] %v1114_v26  ;;  %v1117_v55 = vld [vmem:[#allocation2 + $0x78] sm:$0xff] }
 0x2d3   : > { %v1115_v35 = vld [vmem:[#allocation2 + $0x68] sm:$0xff]  ;;  %1133 = vst [vmem:[%s2386_s15 + $0x78] sm:$0xff] %v1117_v55 }
 0x2d4   : > { %1131 = vst [vmem:[%s2386_s15 + $0x68] sm:$0xff] %v1115_v35 }
 0x2d5 PF: > { %s2683_s4 = sld [smem:[#allocation19_spill]]  ;;  %s2684_s1 = sld [smem:[#allocation27_spill]] }
 0x2d6   : > { %s1148_s14 = sshll.u32 %s2386_s15, 4  ;;  %s1135_s20 = scalar_lea.sflag [#allocation5], %s2359_s12  ;;  %s2554_s14 = int_to_ptr.vmem [resolvable:$true] %s1148_s14 }
 0x2d7   : > { %s1875_s8 = scalar_lea.vmem %s2554_s14, 2048  ;;  %p2685_p3 = scmp.ne.s32.totalorder %s2666_s6, 0 }
 0x2d8   : > { %p1876_p6 = scmp.ne.s32.totalorder %s2554_s14, %s1875_s8  ;;  %s2015_s29 = smov [#allocation11]  }
 0x2d9   : > { %s1879_s28 = sshll.u32 %s2015_s29, 4  ;;  %s1880_s28 = int_to_ptr.vmem [resolvable:$false] %s1879_s28 }
 0x2da   : > { %p1877_p7 = pnand %p1876_p6, %p2685_p3  ;;  %s1881_s5 = scalar_lea.vmem %s1880_s28, 4096 }
 0x2db   : > { %s1375_s24 = sshll.u32 %s2683_s4, 11  ;;  %p1882_p2 = scmp.lt.s32.totalorder %s2554_s14, %s1880_s28 }
 0x2dc   : > { %s2551_s9 = scalar_lea.hbm %s2684_s1, %s1375_s24  ;;  %p1878_p12 = pneg %p1877_p7 }
 0x2dd   : > { %p1883_p13 = scmp.lt.s32.totalorder %s1881_s5, %s1875_s8 }
 0x2df   : > { %p1884_p8 = por %p1883_p13, %p1882_p2 }
 0x2e1   : > { %p1885_p4 = pnand %p1884_p8, %p1878_p12 }
 0x2e3   : > { %1888 = shalt.err (!%p1885_p4)
}
 0x2e4   : > { %s1889_s21 = scalar_lea.hbm %s2551_s9, 2048  ;;  %s1893_s27 = scalar_lea.hbm %s2684_s1, 4096 }
 0x2e5   : > { %p1890_p10 = scmp.ne.s32.totalorder %s2551_s9, %s1889_s21  ;;  %p1894_p0 = scmp.lt.u32.totalorder %s2551_s9, %s2684_s1 }
 0x2e6   : > { %p1895_p1 = scmp.lt.u32.totalorder %s1893_s27, %s1889_s21  ;;  %p1897_p6 = scmp.lt.u32.totalorder %s1889_s21, %s2551_s9 }
 0x2e7   : > { %p1891_p9 = pnand %p1890_p10, %p2685_p3 }
 0x2e8   : > { %p1896_p5 = por %p1895_p1, %p1894_p0 }
 0x2e9   : > { %p1892_p11 = pneg %p1891_p9 }
 0x2ea   : > { %p1898_p7 = por %p1897_p6, %p1896_p5 }
 0x2ec   : > { %p1899_p12 = pnand %p1898_p7, %p1892_p11 }
 0x2ee   : > { %1902 = shalt.err (!%p1899_p12)
}
 0x2ef   : > { %s2016_s11 = smov 128   ;;  %s2017_s7 = smov 8  }
 0x2f0   : > { %1544 = dma.vmem_to_hbm [thread:$0]  (%p2685_p3), %s2554_s14, 2048, %s2551_s9, %s1135_s20, %s2016_s11, %s2016_s11, %s2017_s7  }
 0x2f1 PF: > { %p1564_p2 = scmp.ge.s32.totalorder %s2005_s25, 2  ;;  %s1163_s4 = sand.u32 1, %s1977_s18  }
 0x2f2   : > { %p2686_p13 = scmp.ne.s32.totalorder %s2668_s22, 0  ;;  %s1164_s24 = scalar_lea.sflag [#allocation5], %s1163_s4 }
 0x2f4   : > { %p1560_p8 = pnand %p1564_p2, %p2686_p13 }
 0x2f6   : > { %1960 = dma.done.wait (!%p1560_p8), %s1164_s24, 2048  }
 0x2f7   : > { %1962 = vsyncadd (!%p1560_p8), %s1164_s24, 4294965248  ;;  %s26_s25 = sadd.s32 1, %s2005_s25   ;;  %s2687_s15 = sld [smem:[#allocation16_spill]] }
 0x2f8   : > { %p23_p4 = scmp.ge.s32.totalorder %s26_s25, 6   ;;  %s2688_s13 = sld [smem:[#allocation22_spill]] }
 0x2f9   : > { %s2689_s6 = sld [smem:[#allocation17_spill]]  ;;  %s2690_s20 = sld [smem:[#allocation25_spill]] }
 0x2fa   : > { %s2691_s22 = sld [smem:[#allocation20_spill]]  ;;  %s2692_s12 = sld [smem:[#allocation21_spill]] }
 0x2fb   : > { %s2693_s24 = sld [smem:[#allocation23_spill]]  ;;  %s2694_s16 = smov %s1973_s17 }
 0x2fc   : > { %s2696_s18 = smov %s1981_s19  ;;  %s2698_s21 = smov %s1997_s23 }
 0x2fd   :  { %25 = sbr.rel (!%p23_p4) target bundleno = 16 (0x10), region = 126 }
 0x2fe   : > { %s2695_s17 = smov %s2688_s13 }
 0x2ff   : > { %s2697_s19 = smov %s2689_s6 }
 0x300   : > { %s2699_s23 = smov %s2692_s12 }
 0x304   :  { %1169 = vsyncpa [#allocation4], 1 }
 0x305   :  { %1171 = vsyncpa [#allocation4 + $0x1], 1 }
 0x306   :  { %1172 = vsyncpa [#allocation7], 1 }
 0x307   :  { %1174 = vsyncpa [#allocation7 + $0x1], 1 }
 0x308   :  { %1175 = vsyncpa [#allocation10], 1 }
 0x309   :  { %1177 = vsyncpa [#allocation10 + $0x1], 1 }
 0x30a   :  { %1178 = vsyncpa [#allocation5], 1 }
 0x30b   :  { %1180 = vsyncpa [#allocation5 + $0x1], 1 }

</bundles_post_ra>
